<compile_context>
chip_gen: v7x
topology: tpu7x:2x2x1
jax: 0.10.0
libtpu: 0.0.40
codegen_flags: <defaults>
</compile_context>

<pallas_src>
import math

import jax
import jax.numpy as jnp
import numpy as np
from jax.experimental import pallas as pl
from jax.experimental.pallas import tpu as pltpu


def _round_up(x, m):
    return ((x + m - 1) // m) * m


def _compute_k_l(s, l, k_top, L):
    # Matches: round(max(k_top, np.ceil((L - l) / L * s))) — all static scalars.
    k_ll = (L - l) / L * s
    return int(round(max(k_top, math.ceil(k_ll))))


def _adaptive_windows(s, k):
    # PyTorch adaptive_max_pool1d windows: [floor(j*s/k), ceil((j+1)*s/k))
    return [((j * s) // k, -((-(j + 1) * s) // k)) for j in range(k)]


def dynamic_k_max_pool(x, l, *, k_top, L, intermediate_budget_bytes=2 << 20):
    """adaptive_max_pool1d(x, k_l) with dynamic k_l as a Pallas TPU kernel."""
    assert x.ndim == 3, "expected NCW input"
    assert jnp.issubdtype(x.dtype, jnp.floating), "float dtypes only"
    N, C, S = x.shape
    dtype = x.dtype
    itemsize = jnp.dtype(dtype).itemsize

    k_l = _compute_k_l(S, l, k_top, L)
    windows = _adaptive_windows(S, k_l)

    # ---- Flatten (N, C) into rows; pad everything to TPU-friendly sizes ----
    rows = N * C
    S_pad = _round_up(S, 128)                       # lane axis of the input

    rows8 = _round_up(rows, 8)
    if rows8 <= 128:
        TR = R_pad = rows8                          # block == full dim (legal)
    else:
        TR = 128                                    # lane-dense output tiles,
        R_pad = _round_up(rows, TR)                 # many 'parallel' steps

    # k tile: sublane axis of mask/output blocks -> multiple of 8, sized so the
    # (TK, TR, S_pad) select intermediate stays within a small VMEM budget.
    k8 = _round_up(k_l, 8)
    budget_k = max(8, (intermediate_budget_bytes // (TR * S_pad * itemsize)) // 8 * 8)
    if k8 <= budget_k:
        TK = K_pad = k8
    else:
        TK = budget_k
        K_pad = _round_up(k_l, TK)

    # Padded row-major input.  Pad value is irrelevant: padded columns are
    # masked out of every window and padded rows are sliced away afterwards.
    x2 = jnp.zeros((R_pad, S_pad), dtype=dtype)
    x2 = x2.at[:rows, :S].set(x.reshape(rows, S))

    # Window-membership mask: 1.0 inside window j, 0.0 outside / padded k.
    mask_np = np.zeros((K_pad, S_pad), dtype=np.float32)
    for j, (start, end) in enumerate(windows):
        mask_np[j, start:end] = 1.0
    mask = jnp.asarray(mask_np, dtype=dtype)

    grid = (R_pad // TR, K_pad // TK)               # rows outer, k chunks inner

    def kernel(x_ref, m_ref, o_ref):
        xv = x_ref[...]                             # (TR, S_pad)
        mv = m_ref[...]                             # (TK, S_pad)
        fill = jnp.asarray(-jnp.inf, dtype=xv.dtype)  # max-neutral fill
        # (TK,1,S) cond selects (1,TR,S) values -> (TK,TR,S) -> max over lanes.
        y = jnp.where(mv[:, None, :] != 0, xv[None, :, :], fill)
        o_ref[...] = jnp.max(y, axis=-1).astype(o_ref.dtype)   # (TK, TR)

    cost = pl.CostEstimate(
        flops=3 * R_pad * K_pad * S_pad,
        transcendentals=0,
        bytes_accessed=(R_pad * S_pad
                        + (R_pad // TR) * K_pad * S_pad
                        + K_pad * R_pad) * itemsize,
    )

    out_t = pl.pallas_call(
        kernel,
        out_shape=jax.ShapeDtypeStruct((K_pad, R_pad), dtype),
        grid=grid,
        in_specs=[
            pl.BlockSpec((TR, S_pad), lambda r, k: (r, 0)),   # resident over k
            pl.BlockSpec((TK, S_pad), lambda r, k: (k, 0)),   # small mask tile
        ],
        out_specs=pl.BlockSpec((TK, TR), lambda r, k: (k, r)),  # lane-dense
        compiler_params=pltpu.CompilerParams(
            dimension_semantics=("parallel", "parallel"),
        ),
        cost_estimate=cost,
    )(x2, mask)

    # (K_pad, R_pad) -> (rows, k_l) -> (N, C, k_l): cheap XLA layout plumbing.
    return out_t[:k_l, :rows].T.reshape(N, C, k_l)


def _reference(x, l, *, k_top, L):
    """Pure-JAX reference: adaptive_max_pool1d with dynamic k_l."""
    N, C, S = x.shape
    k_l = _compute_k_l(S, l, k_top, L)
    cols = [jnp.max(x[:, :, s0:s1], axis=-1, keepdims=True)
            for (s0, s1) in _adaptive_windows(S, k_l)]
    return jnp.concatenate(cols, axis=-1)


if __name__ == "__main__":
    key = jax.random.PRNGKey(0)

    # Module parameters (DynamicKMaxPooling has no learnable weights).
    k_top, L = 3, 3
    l = 1  # layer index passed to forward()

    # Small NCW input: batch=2, channels=4, width(seq)=16.
    N, C, S = 2, 4, 16
    x = jax.random.normal(key, (N, C, S), dtype=jnp.float32)

    out = dynamic_k_max_pool(x, l, k_top=k_top, L=L)
    out = jax.block_until_ready(out)

    ref = _reference(x, l, k_top=k_top, L=L)
    assert out.shape == ref.shape, (out.shape, ref.shape)
    assert jnp.allclose(out, ref), "mismatch vs reference adaptive max pool"

    print("KERNEL_OK")
</pallas_src>

<mosaic_0001>
module attributes {stable_mosaic.version = 11 : i64} {
  func.func @kernel(%arg0: i32, %arg1: i32, %arg2: memref<8x128xf32, #tpu.memory_space<vmem>>, %arg3: memref<16x128xf32, #tpu.memory_space<vmem>>, %arg4: memref<16x8xf32, #tpu.memory_space<vmem>>) attributes {dimension_semantics = [#tpu.dimension_semantics<parallel>, #tpu.dimension_semantics<parallel>], iteration_bounds = array<i64: 1, 1>, scalar_prefetch = 0 : i64, scratch_operands = 0 : i64, tpu.core_type = #tpu.core_type<tc>, window_params = [{transform_indices = @transform_0, window_bounds = array<i64: 8, 128>}, {transform_indices = @transform_1, window_bounds = array<i64: 16, 128>}, {transform_indices = @transform_2, window_bounds = array<i64: 16, 8>}]} {
    %c0 = arith.constant 0 : index
    %c0_0 = arith.constant 0 : index
    %0 = vector.load %arg2[%c0, %c0_0] : memref<8x128xf32, #tpu.memory_space<vmem>>, vector<8x128xf32>
    %c0_1 = arith.constant 0 : index
    %c0_2 = arith.constant 0 : index
    %1 = vector.load %arg3[%c0_1, %c0_2] : memref<16x128xf32, #tpu.memory_space<vmem>>, vector<16x128xf32>
    %2 = vector.shape_cast %1 : vector<16x128xf32> to vector<16x1x128xf32>
    %cst = arith.constant 0.000000e+00 : f32
    %3 = vector.broadcast %cst : f32 to vector<16x1x128xf32>
    %4 = arith.cmpf one, %2, %3 : vector<16x1x128xf32>
    %5 = vector.shape_cast %0 : vector<8x128xf32> to vector<1x8x128xf32>
    %cst_3 = arith.constant 0xFF800000 : f32
    %6 = vector.shape_cast %4 : vector<16x1x128xi1> to vector<16x1x128xi1>
    %7 = vector.broadcast %6 : vector<16x1x128xi1> to vector<16x8x128xi1>
    %8 = vector.shape_cast %5 : vector<1x8x128xf32> to vector<1x8x128xf32>
    %9 = vector.broadcast %8 : vector<1x8x128xf32> to vector<16x8x128xf32>
    %10 = vector.broadcast %cst_3 : f32 to vector<16x8x128xf32>
    %11 = arith.select %7, %9, %10 : vector<16x8x128xi1>, vector<16x8x128xf32>
    %cst_4 = arith.constant dense<0xFF800000> : vector<16x8xf32>
    %12 = vector.multi_reduction <maximumf>, %11, %cst_4 [2] : vector<16x8x128xf32> to vector<16x8xf32>
    %c0_5 = arith.constant 0 : index
    %c0_6 = arith.constant 0 : index
    %13 = vector.load %arg4[%c0_5, %c0_6] : memref<16x8xf32, #tpu.memory_space<vmem>>, vector<16x8xf32>
    tpu.vector_store %arg4[%c0_5, %c0_6], %12 {strides = array<i32>} : memref<16x8xf32, #tpu.memory_space<vmem>>, vector<16x8xf32>,
    return
  }
  func.func @transform_0(%arg0: i32, %arg1: i32) -> (i32, i32) {
    %c0_i32 = arith.constant 0 : i32
    %c0_i32_0 = arith.constant 0 : i32
    return %arg0, %c0_i32 : i32, i32
  }
  func.func @transform_1(%arg0: i32, %arg1: i32) -> (i32, i32) {
    %c0_i32 = arith.constant 0 : i32
    %c0_i32_0 = arith.constant 0 : i32
    return %arg1, %c0_i32 : i32, i32
  }
  func.func @transform_2(%arg0: i32, %arg1: i32) -> (i32, i32) {
    %c0_i32 = arith.constant 0 : i32
    return %arg1, %arg0 : i32, i32
  }
}

</mosaic_0001>

<bundles_post_ra>
// kernel: tpu_custom_call.1
= control target key start
LH: loop header
LB: loop body
LE: loop exit
PB: predicated region body
PF: predicated region fallthrough
CT: control target
= control target key end

     0   :  { %7 = vsyncpa [#allocation3], 0  ;;  %s688_s0 = inlined_call_operand.hbm [shape: f32[8,128], index: 0, kind: input, shape index: {}]   ;;  %s689_s1 = inlined_call_operand.hbm [shape: f32[16,128], index: 1, kind: input, shape index: {}]   ;;  %s690_s2 = inlined_call_operand.vmem [shape: f32[16,8], index: 2, kind: output, shape index: {}]  }
   0x1   :  { %8 = vsyncpa [#allocation5], 0  ;;  %s486_s9 = smov [#allocation2]   ;;  %s487_s11 = smov [#allocation4]  }
   0x2   :  { %s15_s10 = sshll.u32 %s486_s9, 4  ;;  %s24_s12 = sshll.u32 %s487_s11, 4  ;;  %s16_s10 = int_to_ptr.vmem [resolvable:$true] %s15_s10  ;;  %s507_s12 = int_to_ptr.vmem [resolvable:$true] %s24_s12 }
   0x3   :  { %s438_s15 = scalar_lea.hbm %s688_s0, 128 }
   0x4   :  { %p439_p0 = scmp.ne.s32.totalorder %s688_s0, %s438_s15  ;;  %p442_p1 = scmp.lt.u32.totalorder %s438_s15, %s688_s0 }
   0x6   :  { %p444_p2 = pnand %p442_p1, %p439_p0 }
   0x8   :  { %447 = shalt.err (!%p444_p2)
}
   0x9   :  { %s448_s20 = scalar_lea.vmem %s16_s10, 128  ;;  %p453_p4 = scmp.lt.s32.totalorder %s16_s10, %s16_s10 }
   0xa   :  { %p449_p3 = scmp.ne.s32.totalorder %s16_s10, %s448_s20  ;;  %p454_p5 = scmp.lt.s32.totalorder %s448_s20, %s448_s20 }
   0xc   :  { %p455_p6 = por %p454_p5, %p453_p4 }
   0xe   :  { %p456_p7 = pnand %p455_p6, %p449_p3 }
  0x10   :  { %459 = shalt.err (!%p456_p7)
}
  0x11   :  { %18 = dma.hbm_to_vmem [thread:$0]  %s688_s0, 128, %s16_s10, [#allocation3]  }
  0x12   :  { %s460_s25 = scalar_lea.hbm %s689_s1, 256 }
  0x13   :  { %p461_p8 = scmp.ne.s32.totalorder %s689_s1, %s460_s25  ;;  %p464_p9 = scmp.lt.u32.totalorder %s460_s25, %s689_s1 }
  0x15   :  { %p466_p10 = pnand %p464_p9, %p461_p8 }
  0x17   :  { %469 = shalt.err (!%p466_p10)
}
  0x18   :  { %s470_s30 = scalar_lea.vmem %s507_s12, 256  ;;  %p475_p12 = scmp.lt.s32.totalorder %s507_s12, %s507_s12 }
  0x19   :  { %p471_p11 = scmp.ne.s32.totalorder %s507_s12, %s470_s30  ;;  %p476_p13 = scmp.lt.s32.totalorder %s470_s30, %s470_s30 }
  0x1b   :  { %p477_p0 = por %p476_p13, %p475_p12 }
  0x1d   :  { %p478_p1 = pnand %p477_p0, %p471_p11 }
  0x1f   :  { %481 = shalt.err (!%p478_p1)
}
  0x20   :  { %s488_s0 = smov 128   ;;  %s489_s3 = smov 8  }
  0x21   :  { %30 = dma.hbm_to_vmem [thread:$0]  %s689_s1, 256, %s507_s12, [#allocation5], %s488_s0, %s488_s0, %s489_s3  }
  0x22   :  { %482 = dma.done.wait [#allocation3], 128  }
  0x23   :  { %483 = vsyncadd [#allocation3], 4294967168 }
  0x24   :  { %484 = dma.done.wait [#allocation5], 256  }
  0x25   :  { %485 = vsyncadd [#allocation5], 4294967040  ;;  %v46_v0 = vlaneseq  ;;  %v490_v1 = vmov 1966171168   ;;  %v39_v8 = vld [vmem:[#allocation4 + $0x8] sm:$0xff]  ;;  %v38_v9 = vld [vmem:[#allocation4] sm:$0xff] }
  0x26   :  { %v44_v2 = vunpack.c.l.s4 %v490_v1  ;;  %v91_v10 = vcombine.high %v39_v8, %v39_v8  ;;  %v42_v12 = vcombine.high %v38_v9, %v38_v9  ;;  %v491_v23 = vmov 0   ;;  %v558_v28 = vld [vmem:[#allocation2] sm:$0xff] }
  0x27   :  { %v47_v3 = vshrl.u32 %v46_v0, 7  ;;  %v333_v4 = vand.u32 127, %v46_v0 }
  0x28   :  { %v45_v5 = vunpack.c.0.s8 %v44_v2 }
  0x29   :  { %v538_v6 = vsub.s32 %v333_v4, %v47_v3  ;;  %v544_v14 = vsub.s32 0, %v47_v3 }
  0x2a   :  { %v540_v7 = vsub.s32 %v45_v5, %v47_v3 }
  0x2c   :  { %v98_v11 = vrot.slane %v39_v8, %v540_v7  ;;  %v49_v13 = vrot.slane %v38_v9, %v540_v7  ;;  %v549_v19 = vrot.slane %v91_v10, %v540_v7  ;;  %v552_v20 = vrot.slane %v42_v12, %v540_v7 }
  0x2e   :  { %v114_v15 = vrot.slane %v98_v11, %v540_v7  ;;  %v65_v16 = vrot.slane %v49_v13, %v540_v7  ;;  %v106_v17 = vcombine.high %v98_v11, %v98_v11  ;;  %v57_v18 = vcombine.high %v49_v13, %v49_v13 }
  0x2f   :  { %v121_v45 = vrot.slane %v549_v19, %v540_v7  ;;  %v72_v46 = vrot.slane %v552_v20, %v540_v7  ;;  %v107_v61 = vcombine.high %v549_v19, %v549_v19  ;;  %v58_v62 = vcombine.high %v552_v20, %v552_v20 }
  0x30   :  { %vm164_vm0 = vcmp.ne.f32.partialorder %v114_v15, 0.0  ;;  %vm156_vm1 = vcmp.ne.f32.partialorder %v65_v16, 0.0  ;;  %v128_v21 = vrot.slane %v106_v17, %v540_v7  ;;  %v79_v22 = vrot.slane %v57_v18, %v540_v7 }
  0x31   :  { %v180_v24 = vsel %vm164_vm0, 1, %v491_v23  ;;  %v172_v25 = vsel %vm156_vm1, 1, %v491_v23  ;;  %v136_v26 = vcombine.high %v114_v15, %v114_v15  ;;  %v87_v27 = vcombine.high %v65_v16, %v65_v16 }
  0x32   :  { %v223_v29 = vrot.slane %v180_v24, %v544_v14  ;;  %v191_v30 = vrot.slane %v172_v25, %v544_v14  ;;  %vm165_vm2 = vcmp.ne.f32.partialorder %v128_v21, 0.0  ;;  %vm157_vm3 = vcmp.ne.f32.partialorder %v79_v22, 0.0 }
  0x33   :  { %v181_v31 = vsel %vm165_vm2, 1, %v491_v23  ;;  %v173_v32 = vsel %vm157_vm3, 1, %v491_v23  ;;  %vm166_vm4 = vcmp.ne.f32.partialorder %v136_v26, 0.0  ;;  %vm158_vm5 = vcmp.ne.f32.partialorder %v87_v27, 0.0 }
  0x34   :  { %vm260_vm6 = vcmp.eq.s32.totalorder %v223_v29, 1  ;;  %vm252_vm7 = vcmp.eq.s32.totalorder %v191_v30, 1  ;;  %v227_v33 = vrot.slane %v181_v31, %v544_v14  ;;  %v195_v34 = vrot.slane %v173_v32, %v544_v14 }
  0x35   :  { %v276_v35 = vsel %vm260_vm6, %v558_v28, -inf  ;;  %v268_v36 = vsel %vm252_vm7, %v558_v28, -inf  ;;  %v182_v37 = vsel %vm166_vm4, 1, %v491_v23  ;;  %v174_v38 = vsel %vm158_vm5, 1, %v491_v23 }
  0x36   :  { %300 = vmax.xlane.f32.xlu1 %v276_v35  ;;  %284 = vmax.xlane.f32.xlu0 %v268_v36  ;;  %vm570_vm8 = vcmp.eq.s32.totalorder %v227_v33, 1  ;;  %vm574_vm9 = vcmp.eq.s32.totalorder %v195_v34, 1  ;;  %v231_v41 = vrot.slane %v182_v37, %v544_v14  ;;  %v199_v42 = vrot.slane %v174_v38, %v544_v14 }
  0x37   :  { %v277_v43 = vsel %vm570_vm8, %v558_v28, -inf  ;;  %v269_v44 = vsel %vm574_vm9, %v558_v28, -inf  ;;  %v138_v49 = vcombine.high %v128_v21, %v128_v21  ;;  %v89_v50 = vcombine.high %v79_v22, %v79_v22 }
  0x38   :  { %vm590_vm10 = vcmp.eq.s32.totalorder %v231_v41, 1  ;;  %vm594_vm11 = vcmp.eq.s32.totalorder %v199_v42, 1  ;;  %vm168_vm12 = vcmp.ne.f32.partialorder %v121_v45, 0.0  ;;  %vm160_vm13 = vcmp.ne.f32.partialorder %v72_v46, 0.0 }
  0x39   :  { %v278_v51 = vsel %vm590_vm10, %v558_v28, -inf  ;;  %v270_v52 = vsel %vm594_vm11, %v558_v28, -inf  ;;  %v184_v53 = vsel %vm168_vm12, 1, %v491_v23  ;;  %v176_v54 = vsel %vm160_vm13, 1, %v491_v23 }
  0x3a   :  { %302 = vmax.xlane.f32.xlu1 %v277_v43  ;;  %286 = vmax.xlane.f32.xlu0 %v269_v44  ;;  %vm167_vm14 = vcmp.ne.f32.partialorder %v138_v49, 0.0  ;;  %vm159_vm15 = vcmp.ne.f32.partialorder %v89_v50, 0.0  ;;  %v239_v55 = vrot.slane %v184_v53, %v544_v14  ;;  %v207_v56 = vrot.slane %v176_v54, %v544_v14 }
  0x3b   :  { %v183_v57 = vsel %vm167_vm14, 1, %v491_v23  ;;  %v175_v58 = vsel %vm159_vm15, 1, %v491_v23  ;;  %v137_v1 = vcombine.high %v121_v45, %v121_v45  ;;  %v88_v2 = vcombine.high %v72_v46, %v72_v46 }
  0x3c   :  { %v235_v59 = vrot.slane %v183_v57, %v544_v14  ;;  %v203_v60 = vrot.slane %v175_v58, %v544_v14  ;;  %vm616_vm0 = vcmp.eq.s32.totalorder %v239_v55, 1  ;;  %vm620_vm1 = vcmp.eq.s32.totalorder %v207_v56, 1 }
  0x3d   :  { %v280_v3 = vsel %vm616_vm0, %v558_v28, -inf  ;;  %v272_v4 = vsel %vm620_vm1, %v558_v28, -inf  ;;  %v135_v9 = vrot.slane %v107_v61, %v540_v7  ;;  %v86_v10 = vrot.slane %v58_v62, %v540_v7 }
  0x3e   :  { %304 = vmax.xlane.f32.xlu1 %v278_v51  ;;  %288 = vmax.xlane.f32.xlu0 %v270_v52  ;;  %vm630_vm2 = vcmp.eq.s32.totalorder %v235_v59, 1  ;;  %vm634_vm3 = vcmp.eq.s32.totalorder %v203_v60, 1  ;;  %vm170_vm4 = vcmp.ne.f32.partialorder %v137_v1, 0.0  ;;  %vm162_vm5 = vcmp.ne.f32.partialorder %v88_v2, 0.0 }
  0x3f   :  { %vm169_vm6 = vcmp.ne.f32.partialorder %v135_v9, 0.0  ;;  %vm161_vm7 = vcmp.ne.f32.partialorder %v86_v10, 0.0  ;;  %v186_v11 = vsel %vm170_vm4, 1, %v491_v23  ;;  %v178_v12 = vsel %vm162_vm5, 1, %v491_v23 }
  0x40   :  { %v279_v13 = vsel %vm630_vm2, %v558_v28, -inf  ;;  %v271_v15 = vsel %vm634_vm3, %v558_v28, -inf  ;;  %v185_v7 = vsel %vm169_vm6, 1, %v491_v23  ;;  %v177_v16 = vsel %vm161_vm7, 1, %v491_v23 }
  0x41   :  { %v243_v17 = vrot.slane %v185_v7, %v544_v14  ;;  %v211_v18 = vrot.slane %v177_v16, %v544_v14  ;;  %v139_v19 = vcombine.high %v135_v9, %v135_v9  ;;  %v90_v20 = vcombine.high %v86_v10, %v86_v10 }
  0x42   :  { %308 = vmax.xlane.f32.xlu1 %v280_v3  ;;  %292 = vmax.xlane.f32.xlu0 %v272_v4  ;;  %v247_v21 = vrot.slane %v186_v11, %v544_v14  ;;  %v215_v22 = vrot.slane %v178_v12, %v544_v14  ;;  %vm398_vm0 = vcmask 1041409   ;;  %vm400_vm1 = vcmask 1042434  }
  0x43   :  { %vm265_vm8 = vcmp.eq.s32.totalorder %v243_v17, 1  ;;  %vm257_vm9 = vcmp.eq.s32.totalorder %v211_v18, 1  ;;  %vm171_vm10 = vcmp.ne.f32.partialorder %v139_v19, 0.0  ;;  %vm163_vm11 = vcmp.ne.f32.partialorder %v90_v20, 0.0 }
  0x44   :  { %v281_v24 = vsel %vm265_vm8, %v558_v28, -inf  ;;  %v273_v25 = vsel %vm257_vm9, %v558_v28, -inf  ;;  %v187_v26 = vsel %vm171_vm10, 1, %v491_v23  ;;  %v179_v27 = vsel %vm163_vm11, 1, %v491_v23 }
  0x45   :  { %vm266_vm12 = vcmp.eq.s32.totalorder %v247_v21, 1  ;;  %vm258_vm13 = vcmp.eq.s32.totalorder %v215_v22, 1  ;;  %v251_v29 = vrot.slane %v187_v26, %v544_v14  ;;  %v219_v30 = vrot.slane %v179_v27, %v544_v14 }
  0x46   :  { %306 = vmax.xlane.f32.xlu1 %v279_v13  ;;  %290 = vmax.xlane.f32.xlu0 %v271_v15  ;;  %v282_v31 = vsel %vm266_vm12, %v558_v28, -inf  ;;  %v274_v32 = vsel %vm258_vm13, %v558_v28, -inf  ;;  %vm402_vm2 = vcmask 1043459   ;;  %vm404_vm3 = vcmask 1044484  }
  0x47   :  { %vm267_vm14 = vcmp.eq.s32.totalorder %v251_v29, 1  ;;  %vm259_vm15 = vcmp.eq.s32.totalorder %v219_v30, 1  ;;  %vm406_vm4 = vcmask 1045509   ;;  %vm408_vm5 = vcmask 1046534  }
  0x48   :  { %v283_v33 = vsel %vm267_vm14, %v558_v28, -inf  ;;  %v275_v23 = vsel %vm259_vm15, %v558_v28, -inf  ;;  %vm410_vm6 = vcmask 1047559   ;;  %vm421_vm7 = vcmask 64512  }
  0x4a   :  { %310 = vmax.xlane.f32.xlu1 %v281_v24  ;;  %294 = vmax.xlane.f32.xlu0 %v273_v25 }
  0x4e   :  { %312 = vmax.xlane.f32.xlu1 %v282_v31  ;;  %296 = vmax.xlane.f32.xlu0 %v274_v32 }
  0x52   :  { %314 = vmax.xlane.f32.xlu1 %v283_v33  ;;  %298 = vmax.xlane.f32.xlu0 %v275_v23 }
  0xc3   :  { %v301_v34 = vpop.xlane.xlu1 %300  ;;  %v285_v35 = vpop.xlane.xlu0 %284 }
  0xc4   :  { %v369_v48 = vrot.slane %v301_v34, %v538_v6  ;;  %v337_v49 = vrot.slane %v285_v35, %v538_v6 }
  0xc7   :  { %v303_v36 = vpop.xlane.xlu1 %302  ;;  %v287_v14 = vpop.xlane.xlu0 %286 }
  0xc8   :  { %v373_v43 = vrot.slane %v303_v36, %v538_v6  ;;  %v341_v44 = vrot.slane %v287_v14, %v538_v6 }
  0xca   :  { %v412_v52 = vsel %vm398_vm0, %v373_v43, %v369_v48  ;;  %v399_v53 = vsel %vm398_vm0, %v341_v44, %v337_v49 }
  0xcb   :  { %v305_v37 = vpop.xlane.xlu1 %304  ;;  %v289_v38 = vpop.xlane.xlu0 %288 }
  0xcc   :  { %v377_v28 = vrot.slane %v305_v37, %v538_v6  ;;  %v345_v45 = vrot.slane %v289_v38, %v538_v6 }
  0xce   :  { %v413_v54 = vsel %vm400_vm1, %v377_v28, %v412_v52  ;;  %v401_v55 = vsel %vm400_vm1, %v345_v45, %v399_v53 }
  0xcf   :  { %v309_v39 = vpop.xlane.xlu1 %308  ;;  %v293_v40 = vpop.xlane.xlu0 %292 }
  0xd0   :  { %v385_v62 = vrot.slane %v309_v39, %v538_v6  ;;  %v353_v63 = vrot.slane %v293_v40, %v538_v6 }
  0xd3   :  { %v307_v41 = vpop.xlane.xlu1 %306  ;;  %v291_v42 = vpop.xlane.xlu0 %290 }
  0xd4   :  { %v381_v50 = vrot.slane %v307_v41, %v538_v6  ;;  %v349_v51 = vrot.slane %v291_v42, %v538_v6 }
  0xd6   :  { %v414_v58 = vsel %vm402_vm2, %v381_v50, %v413_v54  ;;  %v403_v59 = vsel %vm402_vm2, %v349_v51, %v401_v55 }
  0xd7   :  { %v311_v46 = vpop.xlane.xlu1 %310  ;;  %v295_v47 = vpop.xlane.xlu0 %294  ;;  %v415_v2 = vsel %vm404_vm3, %v385_v62, %v414_v58  ;;  %v405_v3 = vsel %vm404_vm3, %v353_v63, %v403_v59 }
  0xd8   :  { %v389_v60 = vrot.slane %v311_v46, %v538_v6  ;;  %v357_v61 = vrot.slane %v295_v47, %v538_v6 }
  0xda   :  { %v416_v8 = vsel %vm406_vm4, %v389_v60, %v415_v2  ;;  %v407_v9 = vsel %vm406_vm4, %v357_v61, %v405_v3 }
  0xdb   :  { %v313_v56 = vpop.xlane.xlu1 %312  ;;  %v297_v57 = vpop.xlane.xlu0 %296 }
  0xdc   :  { %v393_v0 = vrot.slane %v313_v56, %v538_v6  ;;  %v361_v1 = vrot.slane %v297_v57, %v538_v6 }
  0xde   :  { %v417_v12 = vsel %vm408_vm5, %v393_v0, %v416_v8  ;;  %v409_v13 = vsel %vm408_vm5, %v361_v1, %v407_v9 }
  0xdf   :  { %v315_v4 = vpop.xlane.xlu1 %314  ;;  %v299_v5 = vpop.xlane.xlu0 %298 }
  0xe0   :  { %v397_v10 = vrot.slane %v315_v4, %v538_v6  ;;  %v365_v11 = vrot.slane %v299_v5, %v538_v6 }
  0xe2   :  { %v418_v15 = vsel %vm410_vm6, %v397_v10, %v417_v12  ;;  %v411_v7 = vsel %vm410_vm6, %v365_v11, %v409_v13 }
  0xe3   :  { %423 = vst.msk [vmem:[%s690_s2 + $0x8] sm:$0xff] %vm421_vm7, %v418_v15  ;;  %422 = vst.msk [vmem:[%s690_s2] sm:$0xff] %vm421_vm7, %v411_v7 }
  0xe4   :  { %428 = vsyncpa [#allocation3], 1 }
  0xe5   :  { %429 = vsyncpa [#allocation5], 1 }

</bundles_post_ra>
